<compile_context>
chip_gen: v7x
topology: tpu7x:2x2x1
jax: 0.10.0
libtpu: 0.0.40
codegen_flags: <defaults>
</compile_context>

<pallas_src>
import functools

import jax
import jax.numpy as jnp
from jax import lax
from jax.experimental import pallas as pl
from jax.experimental.pallas import tpu as pltpu

_MIB = 1024 * 1024


# ---------------------------------------------------------------------------
# Small helpers
# ---------------------------------------------------------------------------

def _pick_tile(total, target, multiple):
    """Largest tile <= target that is a multiple of `multiple` and evenly
    divides `total`; falls back to the full dimension (always legal)."""
    if total <= target:
        return total
    t = (target // multiple) * multiple
    while t >= multiple:
        if total % t == 0:
            return t
        t -= multiple
    return total


def _vmem_limit(est_bytes):
    """Explicit scoped-VMEM limit: defaults (16 MiB v5e / 32 MiB v6e,v7x) are
    far below physical, but v7x physical is only 64 MiB per core, so cap
    there; keep a 2x margin over the estimate and a 32 MiB floor."""
    return int(min(max(32 * _MIB, 2 * est_bytes), 64 * _MIB))


# ---------------------------------------------------------------------------
# Linear projection kernels (tiled over Dout / batch / rows)
# ---------------------------------------------------------------------------

def _linear_kernel(x_ref, w_ref, o_ref):
    # x_ref: (1, tn, Din), w_ref: (Din, td), o_ref: (1, tn, td)
    o_ref[0] = jnp.dot(
        x_ref[0], w_ref[...], preferred_element_type=jnp.float32
    ).astype(o_ref.dtype)


def _linear_bias_kernel(x_ref, w_ref, b_ref, o_ref):
    # x_ref: (1, tn, Din), w_ref: (Din, td), b_ref: (1, td), o_ref: (1, tn, td)
    y = jnp.dot(x_ref[0], w_ref[...], preferred_element_type=jnp.float32)
    o_ref[0] = (y + b_ref[...].astype(jnp.float32)).astype(o_ref.dtype)


def pallas_linear(x, w, bias=None, *, row_tile=512, col_tile=512):
    """x: (B, N, Din) @ w: (Din, Dout) [+ bias] -> (B, N, Dout)."""
    B, N, Din = x.shape
    Dout = w.shape[1]
    tn = _pick_tile(N, row_tile, 8)
    td = _pick_tile(Dout, col_tile, 128)
    nj, ni = Dout // td, N // tn

    # Size-dependent stationarity: Pallas only re-DMAs a block when its block
    # index changes, so make the ordering that minimizes total HBM reads.
    w_bytes = Din * Dout * w.dtype.itemsize
    x_bytes = B * N * Din * x.dtype.itemsize
    weight_stationary = (w_bytes + nj * x_bytes) <= (x_bytes + B * ni * w_bytes)
    if weight_stationary:
        grid = (nj, B, ni)
        x_spec = pl.BlockSpec((1, tn, Din), lambda j, b, i: (b, i, 0))
        w_spec = pl.BlockSpec((Din, td), lambda j, b, i: (0, j))
        b_spec = pl.BlockSpec((1, td), lambda j, b, i: (0, j))
        o_spec = pl.BlockSpec((1, tn, td), lambda j, b, i: (b, i, j))
    else:
        grid = (B, ni, nj)
        x_spec = pl.BlockSpec((1, tn, Din), lambda b, i, j: (b, i, 0))
        w_spec = pl.BlockSpec((Din, td), lambda b, i, j: (0, j))
        b_spec = pl.BlockSpec((1, td), lambda b, i, j: (0, j))
        o_spec = pl.BlockSpec((1, tn, td), lambda b, i, j: (b, i, j))
    # TODO(synk): for very large Din, add a Din-tiled "arbitrary" grid axis
    # with an f32 VMEM accumulator instead of loading the full Din per block.

    est = 2 * (tn * Din + Din * td + tn * td) * x.dtype.itemsize + tn * td * 4
    cparams = pltpu.CompilerParams(
        dimension_semantics=("parallel", "parallel", "parallel"),
        vmem_limit_bytes=_vmem_limit(est))
    out_shape = jax.ShapeDtypeStruct((B, N, Dout), x.dtype)

    if bias is None:
        return pl.pallas_call(
            _linear_kernel, out_shape=out_shape, grid=grid,
            in_specs=[x_spec, w_spec], out_specs=o_spec,
            compiler_params=cparams,
        )(x, w)

    return pl.pallas_call(
        _linear_bias_kernel, out_shape=out_shape, grid=grid,
        in_specs=[x_spec, w_spec, b_spec], out_specs=o_spec,
        compiler_params=cparams,
    )(x, w, bias.reshape(1, Dout))


# ---------------------------------------------------------------------------
# Attention kernels
# ---------------------------------------------------------------------------

def _flash_group_kernel(q_ref, k_ref, v_ref, o_ref, m_ref, l_ref, acc_ref,
                        *, group, dim_head):
    """Grouped-head flash attention over one (q-tile, kv-tile) grid point.

    Blocks are (1, tile, group*dim_head) views into the fused qkv tensor
    (heads selected purely by BlockSpec index maps).  Scale is pre-folded
    into the q weights, so the kernel applies no score scaling."""
    kv_i = pl.program_id(3)

    @pl.when(kv_i == 0)
    def _init():
        m_ref[...] = jnp.full(m_ref.shape, -jnp.inf, m_ref.dtype)
        l_ref[...] = jnp.zeros(l_ref.shape, l_ref.dtype)
        acc_ref[...] = jnp.zeros(acc_ref.shape, acc_ref.dtype)

    q_all = q_ref[0]
    k_all = k_ref[0]
    v_all = v_ref[0]
    for h in range(group):
        lo, hi = h * dim_head, (h + 1) * dim_head
        q = q_all[:, lo:hi]                       # (tq, Dh), input dtype
        k = k_all[:, lo:hi]                       # (tk, Dh)
        v = v_all[:, lo:hi]                       # (tk, Dh)
        # q @ k^T contracting on Dh -- no explicit transpose; f32 accumulate.
        s = lax.dot_general(q, k, (((1,), (1,)), ((), ())),
                            preferred_element_type=jnp.float32)      # (tq, tk)
        m_prev = m_ref[h]                                             # (tq, 1)
        m_new = jnp.maximum(m_prev, jnp.max(s, axis=-1, keepdims=True))
        alpha = jnp.exp(m_prev - m_new)
        p = jnp.exp(s - m_new)
        l_ref[h] = alpha * l_ref[h] + jnp.sum(p, axis=-1, keepdims=True)
        # Normalization deferred until finalize (after the PV matmul).
        acc_ref[h] = alpha * acc_ref[h] + jnp.dot(
            p.astype(v.dtype), v, preferred_element_type=jnp.float32)
        m_ref[h] = m_new

    @pl.when(kv_i == pl.num_programs(3) - 1)
    def _finalize():
        # Stream per-head outputs into o_ref in 128-lane-aligned slabs
        # (pair heads when dim_head divides 128) instead of one big concat.
        if dim_head <= 128 and 128 % dim_head == 0:
            heads_per_store = min(group, 128 // dim_head)
        else:
            heads_per_store = 1
        for h0 in range(0, group, heads_per_store):
            hs = list(range(h0, min(h0 + heads_per_store, group)))
            pieces = []
            for h in hs:
                inv_l = pl.reciprocal(l_ref[h], approx=True)          # EUP slot
                pieces.append((acc_ref[h] * inv_l).astype(o_ref.dtype))
            slab = pieces[0] if len(pieces) == 1 else jnp.concatenate(pieces, -1)
            o_ref[0, :, h0 * dim_head:(h0 + len(hs)) * dim_head] = slab


def _mha_full_kernel(qkv_ref, o_ref, *, heads, dim_head):
    """Fallback: one batch per grid step, full fused qkv block (1, N, 3*H*Dh).
    Used only for head/dim_head combos with no 128-lane head grouping."""
    inner = heads * dim_head
    qkv = qkv_ref[0]
    for h in range(heads):
        lo, hi = h * dim_head, (h + 1) * dim_head
        q = qkv[:, lo:hi]
        k = qkv[:, inner + lo:inner + hi]
        v = qkv[:, 2 * inner + lo:2 * inner + hi]
        s = lax.dot_general(q, k, (((1,), (1,)), ((), ())),
                            preferred_element_type=jnp.float32)      # (N, N)
        m = jnp.max(s, axis=-1, keepdims=True)
        p = jnp.exp(s - m)
        denom = jnp.sum(p, axis=-1, keepdims=True)
        o = jnp.dot(p.astype(v.dtype), v, preferred_element_type=jnp.float32)
        o = o * pl.reciprocal(denom, approx=True)     # normalize after PV matmul
        o_ref[0, :, lo:hi] = o.astype(o_ref.dtype)


def _pick_head_group(batch, heads, dim_head, max_lanes=512):
    """Largest group dividing `heads` whose lane width group*dim_head is a
    multiple of 128 and <= max_lanes (amortizes per-step overhead, enlarges
    DMAs); keeps batch*groups >= 2 for v7x megacore when possible.  Returns
    None if no 128-lane grouping exists."""
    valid = [g for g in range(1, heads + 1)
             if heads % g == 0 and (g * dim_head) % 128 == 0]
    if not valid:
        return None
    capped = [g for g in valid if g * dim_head <= max_lanes] or valid[:1]
    grp = max(capped)
    while batch * (heads // grp) < 2:
        smaller = [g for g in capped if g < grp]
        if not smaller:
            break
        grp = max(smaller)
    return grp


def pallas_attention(qkv, heads, dim_head):
    """qkv: (B, N, 3*H*Dh) fused projection (softmax scale already folded into
    the q columns of w_qkv) -> (B, N, H*Dh) attention output.

    Head selection is done purely via BlockSpec index maps on the last dim of
    the fused qkv tensor (same array passed three times), so no XLA
    split/transpose copies are materialized."""
    B, N, _ = qkv.shape
    inner = heads * dim_head
    out_shape = jax.ShapeDtypeStruct((B, N, inner), qkv.dtype)
    itemsize = qkv.dtype.itemsize

    grp = _pick_head_group(B, heads, dim_head)
    if grp is not None:
        groups = heads // grp
        gw = grp * dim_head                 # lane width per block (mult of 128)
        tq = _pick_tile(N, 256, 8)
        tk = _pick_tile(N, 256, 8)
        nq, nk = N // tq, N // tk
        kern = functools.partial(_flash_group_kernel, group=grp,
                                 dim_head=dim_head)
        est = (2 * (2 * tq * gw + 2 * tk * gw) * itemsize          # i/o blocks, dbl-buf
               + (2 * grp * tq * 128 + grp * tq * dim_head) * 4    # m/l/acc scratch
               + 4 * tq * tk * 4)                                  # s/p temporaries
        return pl.pallas_call(
            kern,
            out_shape=out_shape,
            grid=(B, groups, nq, nk),
            in_specs=[
                pl.BlockSpec((1, tq, gw), lambda b, g, qi, ki: (b, qi, g)),
                pl.BlockSpec((1, tk, gw),
                             lambda b, g, qi, ki: (b, ki, groups + g)),
                pl.BlockSpec((1, tk, gw),
                             lambda b, g, qi, ki: (b, ki, 2 * groups + g)),
            ],
            out_specs=pl.BlockSpec((1, tq, gw),
                                   lambda b, g, qi, ki: (b, qi, g)),
            scratch_shapes=[
                pltpu.VMEM((grp, tq, 1), jnp.float32),         # running max m
                pltpu.VMEM((grp, tq, 1), jnp.float32),         # running sum l
                pltpu.VMEM((grp, tq, dim_head), jnp.float32),  # unnormalized acc
            ],
            compiler_params=pltpu.CompilerParams(
                dimension_semantics=("parallel", "parallel", "parallel",
                                     "arbitrary"),
                vmem_limit_bytes=_vmem_limit(est)),
        )(qkv, qkv, qkv)

    # Fallback for head/dim_head combos that cannot form 128-lane groups:
    # block the full fused qkv per batch (full last dim is always legal).
    # TODO(synk): such configs are small in practice; KV tiling not applied here.
    kern = functools.partial(_mha_full_kernel, heads=heads, dim_head=dim_head)
    est = 2 * (N * 3 * inner + N * inner) * itemsize + 3 * N * N * 4
    return pl.pallas_call(
        kern,
        out_shape=out_shape,
        grid=(B,),
        in_specs=[pl.BlockSpec((1, N, 3 * inner), lambda b: (b, 0, 0))],
        out_specs=pl.BlockSpec((1, N, inner), lambda b: (b, 0, 0)),
        compiler_params=pltpu.CompilerParams(
            dimension_semantics=("parallel",),
            vmem_limit_bytes=_vmem_limit(est)),
    )(qkv)


# ---------------------------------------------------------------------------
# Module-level parameters & forward
# ---------------------------------------------------------------------------

def init_attention_params(key, dim, heads=8, dim_head=64, dtype=jnp.float32):
    inner_dim = dim_head * heads
    k1, k2, k3 = jax.random.split(key, 3)
    return {
        # stored as (in, out) -> kernels compute x @ W
        "w_qkv": jax.random.normal(k1, (dim, inner_dim * 3), dtype) * 0.02,
        "w_out": jax.random.normal(k2, (inner_dim, dim), dtype) * 0.02,
        "b_out": jax.random.normal(k3, (dim,), dtype) * 0.02,
    }


def prepare_attention_params(params, heads, dim_head):
    """One-time weight prep: fold the 1/sqrt(dim_head) softmax scale into the
    q columns of w_qkv so kernels never apply it (zero runtime cost)."""
    inner = heads * dim_head
    scale = jnp.asarray(dim_head ** (-0.5), jnp.float32)
    w = params["w_qkv"]
    w_q = (w[:, :inner].astype(jnp.float32) * scale).astype(w.dtype)
    out = dict(params)
    out["w_qkv"] = jnp.concatenate([w_q, w[:, inner:]], axis=-1)
    return out


def attention_forward(params, x, heads, dim_head):
    """params must come from prepare_attention_params (scale pre-folded).
    TODO(synk): on v5e, fusing the output projection into the attention kernel
    (f32 accumulator over the head-group axis) would remove one HBM round trip."""
    B, N, dim = x.shape
    project_out = not (heads == 1 and dim_head == dim)

    qkv = pallas_linear(x, params["w_qkv"])                  # (B, N, 3*H*Dh)
    out = pallas_attention(qkv, heads, dim_head)             # (B, N, H*Dh)
    if project_out:
        # Dropout(p=0) is identity (eval semantics).
        out = pallas_linear(out, params["w_out"], params["b_out"])
    return out


# ---------------------------------------------------------------------------
# Pure-JAX reference (correctness check)
# ---------------------------------------------------------------------------

def attention_reference(params, x, heads, dim_head):
    B, N, dim = x.shape
    scale = dim_head ** (-0.5)
    qkv = x @ params["w_qkv"]
    q, k, v = jnp.split(qkv, 3, axis=-1)

    def sh(t):
        return jnp.transpose(t.reshape(B, N, heads, dim_head), (0, 2, 1, 3))

    q, k, v = sh(q), sh(k), sh(v)
    dots = jnp.einsum("bhid,bhjd->bhij", q, k) * scale
    attn = jax.nn.softmax(dots, axis=-1)
    out = jnp.einsum("bhij,bhjd->bhid", attn, v)
    out = jnp.transpose(out, (0, 2, 1, 3)).reshape(B, N, heads * dim_head)
    if not (heads == 1 and dim_head == dim):
        out = out @ params["w_out"] + params["b_out"]
    return out


def _check(heads, dim_head, dim, B=2, N=8, dtype=jnp.float32, seed=0,
           atol=2e-3, rtol=2e-3):
    kx, kp = jax.random.split(jax.random.PRNGKey(seed))
    x = jax.random.normal(kx, (B, N, dim), jnp.float32)
    params = init_attention_params(kp, dim, heads=heads, dim_head=dim_head)

    # Cast first (so kernel and reference see identical operand values), then
    # fold the scale into the qkv weights for the Pallas path only.
    x_run = x.astype(dtype)
    params_cast = jax.tree_util.tree_map(lambda t: t.astype(dtype), params)
    params_run = prepare_attention_params(params_cast, heads, dim_head)

    y = jax.block_until_ready(
        attention_forward(params_run, x_run, heads, dim_head))

    ref_params = jax.tree_util.tree_map(lambda t: t.astype(jnp.float32),
                                        params_cast)
    y_ref = attention_reference(ref_params, x_run.astype(jnp.float32),
                                heads, dim_head)
    y32 = y.astype(jnp.float32)
    assert y.shape == y_ref.shape, (y.shape, y_ref.shape)
    max_err = jnp.max(jnp.abs(y32 - y_ref))
    assert jnp.allclose(y32, y_ref, atol=atol, rtol=rtol), (
        f"mismatch heads={heads} dim_head={dim_head} N={N} dtype={dtype} "
        f"max_err={max_err}")
    return y


if __name__ == "__main__":
    # Main path: grouped flash attention (group=4 -> 256-lane blocks), 1 KV tile.
    _check(heads=4, dim_head=64, dim=32, B=2, N=8)
    # Fallback path: no 128-lane head grouping possible (full-qkv-per-batch).
    _check(heads=2, dim_head=24, dim=16, B=2, N=8)
    # KV/Q-tiled flash path exercised (2 q-tiles x 2 kv-tiles), f32.
    _check(heads=4, dim_head=64, dim=32, B=2, N=512)
    # bf16 operands with f32 accumulation (v6e/v7x operating point).
    _check(heads=4, dim_head=64, dim=32, B=2, N=64, dtype=jnp.bfloat16,
           atol=5e-2, rtol=5e-2)
    print("KERNEL_OK")
</pallas_src>

<mosaic_0001>
module attributes {stable_mosaic.version = 11 : i64} {
  func.func @_linear_kernel(%arg0: i32, %arg1: i32, %arg2: i32, %arg3: memref<1x8x32xf32, #tpu.memory_space<vmem>>, %arg4: memref<32x384xf32, #tpu.memory_space<vmem>>, %arg5: memref<1x8x384xf32, #tpu.memory_space<vmem>>) attributes {dimension_semantics = [#tpu.dimension_semantics<parallel>, #tpu.dimension_semantics<parallel>, #tpu.dimension_semantics<parallel>], iteration_bounds = array<i64: 2, 2, 1>, scalar_prefetch = 0 : i64, scratch_operands = 0 : i64, tpu.core_type = #tpu.core_type<tc>, window_params = [{transform_indices = @transform_0, window_bounds = array<i64: 1, 8, 32>}, {transform_indices = @transform_1, window_bounds = array<i64: 32, 384>}, {transform_indices = @transform_2, window_bounds = array<i64: 1, 8, 384>}]} {
    %c0 = arith.constant 0 : index
    %c0_0 = arith.constant 0 : index
    %c0_1 = arith.constant 0 : index
    %0 = vector.load %arg3[%c0, %c0_0, %c0_1] : memref<1x8x32xf32, #tpu.memory_space<vmem>>, vector<1x8x32xf32>
    %1 = vector.shape_cast %0 : vector<1x8x32xf32> to vector<8x32xf32>
    %c0_2 = arith.constant 0 : index
    %c0_3 = arith.constant 0 : index
    %2 = vector.load %arg4[%c0_2, %c0_3] : memref<32x384xf32, #tpu.memory_space<vmem>>, vector<32x384xf32>
    %cst = arith.constant dense<0.000000e+00> : vector<8x384xf32>
    %3 = tpu.matmul %1, %2, %cst {dimension_numbers = #tpu.dot_dimension_numbers<[1], [0], [0], [1], [0, 0, 1, 1], [], []>} : vector<8x32xf32>, vector<32x384xf32>, vector<8x384xf32> -> vector<8x384xf32>
    %c0_4 = arith.constant 0 : index
    %c0_5 = arith.constant 0 : index
    %c0_6 = arith.constant 0 : index
    %4 = vector.load %arg5[%c0_4, %c0_5, %c0_6] : memref<1x8x384xf32, #tpu.memory_space<vmem>>, vector<1x8x384xf32>
    %5 = vector.shape_cast %4 : vector<1x8x384xf32> to vector<8x384xf32>
    %6 = vector.shape_cast %3 : vector<8x384xf32> to vector<1x8x384xf32>
    tpu.vector_store %arg5[%c0_4, %c0_5, %c0_6], %6 {strides = array<i32>} : memref<1x8x384xf32, #tpu.memory_space<vmem>>, vector<1x8x384xf32>,
    return
  }
  func.func @transform_0(%arg0: i32, %arg1: i32, %arg2: i32) -> (i32, i32, i32) {
    %c0_i32 = arith.constant 0 : i32
    %c0_i32_0 = arith.constant 0 : i32
    return %arg1, %arg2, %c0_i32 : i32, i32, i32
  }
  func.func @transform_1(%arg0: i32, %arg1: i32, %arg2: i32) -> (i32, i32) {
    %c0_i32 = arith.constant 0 : i32
    %c0_i32_0 = arith.constant 0 : i32
    return %c0_i32, %arg0 : i32, i32
  }
  func.func @transform_2(%arg0: i32, %arg1: i32, %arg2: i32) -> (i32, i32, i32) {
    %c0_i32 = arith.constant 0 : i32
    return %arg1, %arg2, %arg0 : i32, i32, i32
  }
}

</mosaic_0001>

<bundles_post_ra>
// kernel: tpu_custom_call.1
= control target key start
LH: loop header
LB: loop body
LE: loop exit
PB: predicated region body
PF: predicated region fallthrough
CT: control target
= control target key end

     0   :  { %s1275_s0 = inlined_call_operand.hbm [shape: f32[2,8,32], index: 0, kind: input, shape index: {}]   ;;  %s1276_s1 = inlined_call_operand.hbm [shape: f32[32,768], index: 1, kind: input, shape index: {}]   ;;  %s1277_s2 = inlined_call_operand.hbm [shape: f32[2,8,768], index: 2, kind: output, shape index: {}]  }
   0x1   :  { %1285 = sst [smem:[#allocation17_spill]] %s1275_s0 }
   0x2   :  { %7 = vsyncpa [#allocation3], 0 }
   0x3   :  { %9 = vsyncpa [#allocation3 + $0x1], 0 }
   0x4   :  { %10 = vsyncpa [#allocation6], 0 }
   0x5   :  { %12 = vsyncpa [#allocation6 + $0x1], 0 }
   0x6   :  { %13 = vsyncpa [#allocation4], 0 }
   0x7   :  { %15 = vsyncpa [#allocation4 + $0x1], 0  ;;  %s942_s9 = smov 0   ;;  %s944_s10 = smov 0  }
   0x8   :  { %s946_s11 = smov 0   ;;  %s948_s12 = smov 0  }
   0x9   :  { %s950_s13 = smov 0   ;;  %s952_s14 = smov 0  }
   0xa   :  { %s954_s15 = smov 0   ;;  %s956_s16 = smov 0  }
   0xb   :  { %s958_s17 = smov 0   ;;  %s960_s18 = smov 0  }
   0xc   :  { %s962_s19 = smov 0   ;;  %s964_s20 = smov 0  }
   0xd   :  { %s966_s21 = smov 0   ;;  %s968_s22 = smov 0  }
   0xe LB: > { %1286 = sst [smem:[#allocation11_spill]] %s908_s20  ;;  %s520_s23 = sadd.s32 4294967295, %s916_s22   ;;  %s916_s22 = sphi %s968_s22, %s21_s22   ;;  %s912_s21 = sphi %s966_s21, %s1314_s21   ;;  %s908_s20 = sphi %s964_s20, %s1313_s20   ;;  %s904_s19 = sphi %s962_s19, %s1312_s19   ;;  %s900_s18 = sphi %s960_s18, %s1311_s18   ;;  %s896_s17 = sphi %s958_s17, %s1323_s17   ;;  %s892_s16 = sphi %s956_s16, %s1322_s16   ;;  %s888_s15 = sphi %s954_s15, %s1321_s15   ;;  %s884_s14 = sphi %s952_s14, %s1320_s14   ;;  %s880_s13 = sphi %s950_s13, %s1319_s13   ;;  %s876_s12 = sphi %s948_s12, %s1318_s12   ;;  %s872_s11 = sphi %s946_s11, %s1317_s11   ;;  %s868_s10 = sphi %s944_s10, %s1316_s10   ;;  %s864_s9 = sphi %s942_s9, %s1315_s9  }
   0xf   : > { %1287 = sst [smem:[#allocation12_spill]] %s912_s21  ;;  %s521_s24 = sadd.s32 4294967294, %s916_s22  }
  0x10   : > { %s36_s25 = sadd.s32 1, %s908_s20  ;;  %s40_s26 = sadd.s32 1, %s912_s21 }
  0x11   : > { %p38_p0 = scmp.ge.s32.totalorder %s36_s25, 2  ;;  %s49_s27 = sadd.s32 1, %s896_s17 }
  0x12   : > { %p56_p1 = scmp.ne.s32.totalorder %s896_s17, %s892_s16  ;;  %p57_p2 = scmp.eq.s32.totalorder %s916_s22, 0 }
  0x13   : > { %s1325_s25 = smov (%p38_p0, %s36_s25), 0  ;;  %s1327_s26 = smov (!%p38_p0, %s40_s26), %s912_s21 }
  0x14   : > { %1288 = sst [smem:[#allocation13_spill]] %s1325_s25  ;;  %s44_s28 = ssub.s32 %s908_s20, %s1325_s25 }
  0x15   : > { %p1025_p3 = por %p57_p2, %p56_p1  ;;  %p42_p4 = scmp.ge.s32.totalorder %s1327_s26, 2 }
  0x16   : > { %p47_p5 = scmp.eq.s32.totalorder %s44_s28, 0  ;;  %p62_p6 = scmp.ne.s32.totalorder %s892_s16, %s888_s15 }
  0x17   : > { %p63_p7 = scmp.eq.s32.totalorder %s520_s23, 0  ;;  %s1329_s26 = smov (%p42_p4, %s1327_s26), 0 }
  0x18   : > { %1290 = sst [smem:[#allocation14_spill]] %s1329_s26  ;;  %s72_s4 = ssub.s32 %s912_s21, %s1329_s26 }
  0x19   : > { %s1035_s30 = scalar_select %p47_p5, %s896_s17, %s49_s27  }
  0x1a   : > { %p1037_p8 = por %p63_p7, %p62_p6  ;;  %p73_p9 = scmp.eq.s32.totalorder %s72_s4, 0 }
  0x1b   : > { %1291 = sst [smem:[#allocation15_spill]] %s1035_s30  ;;  %s75_s5 = sadd.s32 1, %s884_s14 }
  0x1c   : > { %s1292_s3 = scalar_select %p1037_p8, 1, 0 }
  0x1d   : > { %p82_p10 = scmp.ne.s32.totalorder %s884_s14, %s880_s13  ;;  %p88_p11 = scmp.ne.s32.totalorder %s880_s13, %s876_s12 }
  0x1e   : > { %s1049_s6 = scalar_select %p73_p9, %s884_s14, %s75_s5  }
  0x1f   : > { %p1053_p12 = por %p82_p10, %p57_p2  ;;  %p1057_p13 = por %p88_p11, %p63_p7 }
  0x20   : > { %1293 = sst [smem:[#allocation16_spill]] %s1049_s6  ;;  %s102_s15 = sor.u32 %s72_s4, %s44_s28 }
  0x21   : > { %s1295_s8 = scalar_select %p1057_p13, 1, 0 }
  0x22   : > { %s105_s27 = sadd.s32 1, %s872_s11  ;;  %p103_p0 = scmp.eq.s32.totalorder %s102_s15, 0 }
  0x23   : > { %p115_p1 = scmp.ne.s32.totalorder %s872_s11, %s868_s10  ;;  %p116_p4 = scmp.eq.s32.totalorder %s520_s23, 3 }
  0x24   : > { %p121_p5 = scmp.ne.s32.totalorder %s868_s10, %s864_s9  ;;  %p122_p6 = scmp.eq.s32.totalorder %s521_s24, 3 }
  0x25   : > { %s1069_s12 = scalar_select %p103_p0, %s872_s11, %s105_s27  }
  0x26   : > { %p1071_p2 = por %p116_p4, %p115_p1  ;;  %p586_p7 = scmp.lt.s32.totalorder %s916_s22, 4 }
  0x27   : > { %p1078_p9 = por %p122_p6, %p121_p5  ;;  %s142_s4 = sand.u32 1, %s896_s17  }
  0x28   : > { %s1296_s5 = scalar_select %p1071_p2, 1, 0 }
  0x29   : > { %s1297_s28 = scalar_select %p1078_p9, 1, 0 }
  0x2a   : > { %s524_s15 = sshll.u32 %s142_s4, 3  ;;  %s525_s26 = sshll.u32 %s908_s20, 7 }
  0x2b   : > { %s1298_s0 = sld [smem:[#allocation17_spill]]  ;;  %s146_s27 = scalar_lea.vmem [#allocation2], %s524_s15 }
  0x2c   : > { %s154_s6 = sshll.u32 %s146_s27, 4  ;;  %p1093_p10 = pnand %p586_p7, %p1025_p3  ;;  %s1089_s6 = int_to_ptr.vmem [resolvable:$true] %s154_s6 }
  0x2d   : > { %p1099_p11 = pnand %p586_p7, %p1053_p12 }
  0x2e   : > { %p708_p5 = pneg %p1093_p10 }
  0x31   : > { %s1087_s30 = scalar_lea.hbm %s1298_s0, %s525_s26  ;;  %s143_s26 = scalar_lea.sflag [#allocation3], %s142_s4 }
  0x32   : > { %s706_s15 = scalar_lea.hbm %s1087_s30, 128  ;;  %s711_s7 = scalar_lea.hbm %s1298_s0, 256 }
  0x33   : > { %p707_p4 = scmp.ne.s32.totalorder %s1087_s30, %s706_s15  ;;  %p712_p12 = scmp.lt.u32.totalorder %s1087_s30, %s1298_s0 }
  0x34   : > { %p713_p7 = scmp.lt.u32.totalorder %s711_s7, %s706_s15  ;;  %p715_p1 = scmp.lt.u32.totalorder %s706_s15, %s1087_s30 }
  0x35   : > { %p709_p3 = pnand %p708_p5, %p707_p4 }
  0x36   : > { %p714_p0 = por %p713_p7, %p712_p12 }
  0x37   : > { %p710_p6 = pneg %p709_p3 }
  0x38   : > { %p716_p9 = por %p715_p1, %p714_p0 }
  0x3a   : > { %p717_p2 = pnand %p716_p9, %p710_p6 }
  0x3c   : > { %720 = shalt.err (!%p717_p2)
}
  0x3d   : > { %s721_s4 = scalar_lea.vmem %s1089_s6, 128  ;;  %s918_s29 = smov [#allocation2]  }
  0x3e   : > { %p722_p4 = scmp.ne.s32.totalorder %s1089_s6, %s721_s4  ;;  %s726_s23 = sshll.u32 %s918_s29, 4  ;;  %s727_s23 = int_to_ptr.vmem [resolvable:$false] %s726_s23 }
  0x3f   : > { %s728_s20 = scalar_lea.vmem %s727_s23, 256  ;;  %p729_p8 = scmp.lt.s32.totalorder %s1089_s6, %s727_s23 }
  0x40   : > { %p724_p3 = pnand %p722_p4, %p708_p5  ;;  %p730_p12 = scmp.lt.s32.totalorder %s728_s20, %s721_s4 }
  0x42   : > { %p725_p13 = pneg %p724_p3  ;;  %p731_p7 = por %p730_p12, %p729_p8 }
  0x44   : > { %p732_p0 = pnand %p731_p7, %p725_p13 }
  0x46   : > { %735 = shalt.err (!%p732_p0)
}
  0x47   : > { %578 = dma.hbm_to_vmem [thread:$0]  (!%p1093_p10), %s1087_s30, 128, %s1089_s6, %s143_s26  }
  0x48   : > { %p1301_p2 = scmp.lt.s32.totalorder %s916_s22, 5  ;;  %p1302_p9 = scmp.ge.s32.totalorder %s916_s22, 1 }
  0x49   : > { %s161_s7 = sand.u32 1, %s884_s14   ;;  %s534_s27 = smul.u32 384, %s912_s21 }
  0x4a   : > { %p1134_p1 = pnand %p1302_p9, %p1301_p2  ;;  %s565_s4 = smul.u32 96, %s161_s7 }
  0x4b   : > { %s1143_s23 = scalar_lea.hbm %s1276_s1, %s534_s27  ;;  %s1147_s6 = scalar_lea.sflag [#allocation6], %s161_s7 }
  0x4c   : > { %s165_s20 = scalar_lea.vmem [#allocation5], %s565_s4  ;;  %s736_s26 = scalar_lea.hbm %s1143_s23, 1536 }
  0x4d   : > { %s172_s30 = sshll.u32 %s165_s20, 4  ;;  %p737_p8 = scmp.ne.s32.totalorder %s1143_s23, %s736_s26  ;;  %s1145_s30 = int_to_ptr.vmem [resolvable:$true] %s172_s30 }
  0x4e   : > { %p738_p13 = pneg %p1099_p11  ;;  %s741_s24 = scalar_lea.hbm %s1276_s1, 3072 }
  0x4f   : > { %p742_p6 = scmp.lt.u32.totalorder %s1143_s23, %s1276_s1  ;;  %p743_p4 = scmp.lt.u32.totalorder %s741_s24, %s736_s26 }
  0x50   : > { %p739_p10 = pnand %p738_p13, %p737_p8  ;;  %p745_p12 = scmp.lt.u32.totalorder %s736_s26, %s1143_s23 }
  0x51   : > { %p744_p3 = por %p743_p4, %p742_p6 }
  0x52   : > { %p740_p5 = pneg %p739_p10 }
  0x53   : > { %p746_p7 = por %p745_p12, %p744_p3 }
  0x55   : > { %p747_p0 = pnand %p746_p7, %p740_p5 }
  0x57   : > { %750 = shalt.err (!%p747_p0)
}
  0x58   : > { %s751_s7 = scalar_lea.vmem %s1145_s30, 1536  ;;  %s919_s4 = smov [#allocation5]  }
  0x59   : > { %p752_p2 = scmp.ne.s32.totalorder %s1145_s30, %s751_s7  ;;  %s756_s20 = sshll.u32 %s919_s4, 4  ;;  %s757_s20 = int_to_ptr.vmem [resolvable:$false] %s756_s20 }
  0x5a   : > { %s758_s0 = scalar_lea.vmem %s757_s20, 3072  ;;  %p759_p10 = scmp.lt.s32.totalorder %s1145_s30, %s757_s20 }
  0x5b   : > { %p754_p9 = pnand %p752_p2, %p738_p13  ;;  %p760_p6 = scmp.lt.s32.totalorder %s758_s0, %s751_s7 }
  0x5d   : > { %p755_p8 = pneg %p754_p9  ;;  %p761_p4 = por %p760_p6, %p759_p10 }
  0x5f   : > { %p762_p3 = pnand %p761_p4, %p755_p8 }
  0x61   : > { %765 = shalt.err (!%p762_p3)
}
  0x62   : > { %s920_s21 = smov 768   ;;  %s921_s26 = smov 384  }
  0x63   : > { %s922_s27 = smov 24   ;;  %184 = sbr.rel (%p1134_p1) target bundleno = 350 (0x15e), region = 28 }
  0x64   : > { %581 = dma.hbm_to_vmem [thread:$0]  (!%p1099_p11), %s1143_s23, 1536, %s1145_s30, %s1147_s6, %s920_s21, %s921_s26, %s922_s27  }
  0x65   : > { %s186_s29 = sand.u32 (!%p1134_p1), 1, %s892_s16   ;;  %p1304_p13 = scmp.ne.s32.totalorder (!%p1134_p1), %s1292_s3, 0 }
  0x66   : > { %s1178_s24 = sshll.u32 (!%p1134_p1), %s186_s29, 3  ;;  %s187_s7 = scalar_lea.sflag (!%p1134_p1), [#allocation3], %s186_s29 }
  0x67   : > { %s190_s4 = scalar_lea.vmem (!%p1134_p1), [#allocation2], %s1178_s24 }
  0x6a   : > { %851 = dma.done.wait (%p1304_p13), %s187_s7, 128  }
  0x6b   : > { %853 = vsyncadd (%p1304_p13), %s187_s7, 4294967168  ;;  %s195_s25 = sand.u32 1, %s880_s13   ;;  %p1305_p11 = scmp.ne.s32.totalorder %s1295_s8, 0 }
  0x6c   : > { %s566_s23 = smul.u32 96, %s195_s25  ;;  %s196_s30 = scalar_lea.sflag [#allocation6], %s195_s25 }
  0x6e   : > { %s199_s15 = scalar_lea.vmem [#allocation5], %s566_s23 }
  0x6f   : > { %855 = dma.done.wait (%p1305_p11), %s196_s30, 1536  }
  0x70   : > { %857 = vsyncadd (%p1305_p11), %s196_s30, 4294965760  ;;  %v923_v0 = vmov 0.0|0.0   ;;  %v924_v1 = vmov 0.0   ;;  %vm925_vm0 = vmmov 0   ;;  %v229_v2 = vld [vmem:[%s199_s15 + $0x8] sm:$0xff]  ;;  %v232_v3 = vld [vmem:[%s199_s15 + $0x20] sm:$0xff] }
  0x71   : > { %559 = vmatprep.subr.bf16.mxu1 %v923_v0  ;;  %308 = vmatprep.mubr.f32.mxu0 %v924_v1  ;;  %v228_v4 = vld [vmem:[%s199_s15] sm:$0xff]  ;;  %v551_v5 = vpack.c.bf16 %v232_v3, %v229_v2  ;;  %v231_v6 = vld [vmem:[%s199_s15 + $0x18] sm:$0xff]  ;;  %v230_v7 = vld [vmem:[%s199_s15 + $0x10] sm:$0xff]  ;;  %vm240_vm1 = vcmask 261120   ;;  %s222_s3 = sand.u32 1, %s868_s10   ;;  %s396_s6 = smul.u32 3, %s904_s19 }
  0x72   : > { %548 = vmatprep.mubr.msk.f32.mxu1 %vm925_vm0, %v924_v1  ;;  %v233_v8 = vld [vmem:[%s199_s15 + $0x28] sm:$0xff]  ;;  %v553_v9 = vpack.c.bf16 %v231_v6, %v228_v4  ;;  %v235_v11 = vld [vmem:[%s199_s15 + $0x38] sm:$0xff]  ;;  %v238_v12 = vld [vmem:[%s199_s15 + $0x50] sm:$0xff]  ;;  %s567_s8 = smul.u32 24, %s222_s3  ;;  %p1306_p5 = scmp.ne.s32.totalorder %s1296_s5, 0 }
  0x73   : > { %v560_v10 = vpack.c.bf16 %v233_v8, %v230_v7  ;;  %v234_v13 = vld [vmem:[%s199_s15 + $0x30] sm:$0xff]  ;;  %552 = vmatprep.subr.bf16.mxu0 %v551_v5  ;;  %v555_v14 = vpack.c.bf16 %v238_v12, %v235_v11  ;;  %v237_v15 = vld [vmem:[%s199_s15 + $0x48] sm:$0xff]  ;;  %v236_v16 = vld [vmem:[%s199_s15 + $0x40] sm:$0xff]  ;;  %s568_s20 = smul.u32 6, %s900_s18  ;;  %s389_s18 = scalar_lea.sflag [#allocation4], %s222_s3 }
  0x74   : > { %v239_v17 = vld [vmem:[%s199_s15 + $0x58] sm:$0xff]  ;;  %554 = vmatpush1.bf16.msra.mxu0 %v553_v9  ;;  %v557_v18 = vpack.c.bf16 %v237_v15, %v234_v13  ;;  %s224_s21 = scalar_lea.vmem [#allocation7], %s567_s8 }
  0x75   : > { %561 = vmatpush3.bf16.msra.mxu1 %v560_v10  ;;  %v563_v19 = vpack.c.bf16 %v239_v17, %v236_v16  ;;  %556 = vmatprep.subr.bf16.mxu0 %v555_v14  ;;  %v227_v20 = vld [vmem:[%s190_s4] sm:$0xff]  ;;  %s403_s0 = sadd.s32 %s568_s20, %s396_s6  ;;  %s407_s26 = sshll.u32 %s224_s21, 4  ;;  %s1195_s26 = int_to_ptr.vmem [resolvable:$true] %s407_s26 }
  0x76   : > { %562 = vmatprep.subr.bf16.mxu1 %v923_v0  ;;  %s531_s27 = sshll.u32 %s403_s0, 7  ;;  %s766_s19 = scalar_lea.vmem %s1195_s26, 384 }
  0x77   : > { %s1200_s7 = scalar_lea.hbm %s1277_s2, %s531_s27  ;;  %p767_p1 = scmp.ne.s32.totalorder %s1195_s26, %s766_s19 }
  0x78   : > { %558 = vmatpush1.bf16.msra.mxu0 %v557_v18  ;;  %s926_s4 = smov [#allocation7]  }
  0x79   : > { %564 = vmatpush3.bf16.msra.mxu1 %v563_v19  ;;  %p768_p12 = pnand %p767_p1, %p1306_p5  ;;  %s770_s25 = sshll.u32 %s926_s4, 4  ;;  %s771_s25 = int_to_ptr.vmem [resolvable:$false] %s770_s25 }
  0x7a   : > { %s772_s23 = scalar_lea.vmem %s771_s25, 768  ;;  %p773_p0 = scmp.lt.s32.totalorder %s1195_s26, %s771_s25 }
  0x7b   : > { %529 = vmatmul.mubr.msk.f32.vlgmr.msra.gmra.mrb[0].mxu0 %vm240_vm1, %v227_v20  ;;  %p769_p7 = pneg %p768_p12  ;;  %p774_p2 = scmp.lt.s32.totalorder %s772_s23, %s766_s19 }
  0x7c   : > { %549 = vmatmul.mubr.msk.f32.vlgmr.msra.gmra.mrb[0].mxu1 %vm240_vm1, %v227_v20 }
  0x7d   : > { %p775_p9 = por %p774_p2, %p773_p0 }
  0x7f   : > { %p776_p8 = pnand %p775_p9, %p769_p7 }
 0x14e   : > { %v310_v21 = vpop.f32.mrb[0].mxu0 }
 0x14f   : > { %v381_v22 = vpop.f32.mrb[0].mxu1  ;;  %385 = vst [vmem:[%s224_s21] sm:$0xff] %v310_v21  ;;  %v312_v23 = vpop.f32.mrb[1].mxu0 }
 0x150   : > { %387 = vst [vmem:[%s224_s21 + $0x10] sm:$0xff] %v381_v22  ;;  %v550_v24 = vpop.f32.mrb[1].mxu1  ;;  %386 = vst [vmem:[%s224_s21 + $0x8] sm:$0xff] %v312_v23 }
 0x151   : > { %779 = shalt.err (!%p776_p8)
}
 0x152   : > { %s780_s30 = scalar_lea.hbm %s1200_s7, 384  ;;  %s784_s8 = scalar_lea.hbm %s1277_s2, 1536 }
 0x153   : > { %p781_p10 = scmp.ne.s32.totalorder %s1200_s7, %s780_s30  ;;  %p785_p3 = scmp.lt.u32.totalorder %s1200_s7, %s1277_s2 }
 0x154   : > { %p786_p13 = scmp.lt.u32.totalorder %s784_s8, %s780_s30  ;;  %p788_p1 = scmp.lt.u32.totalorder %s780_s30, %s1200_s7 }
 0x155   : > { %p782_p6 = pnand %p781_p10, %p1306_p5 }
 0x156   : > { %p787_p11 = por %p786_p13, %p785_p3 }
 0x157   : > { %p783_p4 = pneg %p782_p6 }
 0x158   : > { %p789_p12 = por %p788_p1, %p787_p11 }
 0x15a   : > { %p790_p7 = pnand %p789_p12, %p783_p4 }
 0x15c   : > { %793 = shalt.err (!%p790_p7)
}
 0x15d   : > { %573 = dma.vmem_to_hbm [thread:$0]  (%p1306_p5), %s1195_s26, 384, %s1200_s7, %s389_s18  }
 0x15e PF: > { %p587_p0 = scmp.ge.s32.totalorder %s916_s22, 2  ;;  %s419_s0 = sand.u32 1, %s864_s9  }
 0x15f   : > { %p1307_p2 = scmp.ne.s32.totalorder %s1297_s28, 0  ;;  %s420_s21 = scalar_lea.sflag [#allocation4], %s419_s0 }
 0x161   : > { %p583_p9 = pnand %p587_p0, %p1307_p2 }
 0x163   : > { %859 = dma.done.wait (!%p583_p9), %s420_s21, 384  }
 0x164   : > { %861 = vsyncadd (!%p583_p9), %s420_s21, 4294966912  ;;  %s21_s22 = sadd.s32 1, %s916_s22   ;;  %s1309_s5 = sld [smem:[#allocation16_spill]] }
 0x165   : > { %p1228_p8 = scmp.ge.s32.totalorder %s21_s22, 6   ;;  %s1310_s26 = sld [smem:[#allocation15_spill]] }
 0x166   : > { %s1311_s18 = sld [smem:[#allocation11_spill]]  ;;  %s1312_s19 = sld [smem:[#allocation12_spill]] }
 0x167   : > { %s1313_s20 = sld [smem:[#allocation13_spill]]  ;;  %s1314_s21 = sld [smem:[#allocation14_spill]] }
 0x168   : > { %s1315_s9 = smov %s868_s10  ;;  %s1316_s10 = smov %s872_s11 }
 0x169   : > { %s1317_s11 = smov %s1069_s12  ;;  %s1318_s12 = smov %s880_s13 }
 0x16a   : > { %s1319_s13 = smov %s884_s14  ;;  %s1320_s14 = smov %s1309_s5 }
 0x16b   : > { %s1321_s15 = smov %s892_s16  ;;  %s1322_s16 = smov %s896_s17 }
 0x16c   : > { %s1323_s17 = smov %s1310_s26  ;;  %20 = sbr.rel (!%p1228_p8) target bundleno = 14 (0xe), region = 86 }
 0x173   :  { %425 = vsyncpa [#allocation3], 1 }
 0x174   :  { %427 = vsyncpa [#allocation3 + $0x1], 1 }
 0x175   :  { %428 = vsyncpa [#allocation6], 1 }
 0x176   :  { %430 = vsyncpa [#allocation6 + $0x1], 1 }
 0x177   :  { %431 = vsyncpa [#allocation4], 1 }
 0x178   :  { %433 = vsyncpa [#allocation4 + $0x1], 1 }

</bundles_post_ra>
